<compile_context>
chip_gen: v5e
topology: v5e:2x2
jax: 0.10.0
libtpu: 0.0.40
codegen_flags: <defaults>
</compile_context>

<pallas_src>
import functools
import math

import jax
import jax.numpy as jnp
from jax.experimental import pallas as pl
from jax.experimental.pallas import tpu as pltpu


_VMEM_LIMIT = 48 * 1024 * 1024   # <= ~48 MiB keeps v7x (64 MiB/TC) safe; fine on v5e/v6e.
_LANE = 128


def _round_up(x, m):
    return ((x + m - 1) // m) * m


def _row_tile(m, tm):
    """Row-tile size: full extent for tiny M, otherwise a multiple of 8 capped
    so the row grid has >= 2 steps (v7x megacore) and never exceeds tm."""
    if m <= 8:
        return m
    half = _round_up(-(-m // 2), 8)            # cdiv(m, 2) rounded up to 8
    return max(8, min((tm // 8) * 8, half))


def _pad_cols(w, c_pad):
    c = w.shape[1]
    if c == c_pad:
        return w
    return jnp.pad(w, ((0, 0), (0, c_pad - c)))


def _pad_vec(v, c_pad, fill):
    c = v.shape[0]
    if c == c_pad:
        return v
    return jnp.pad(v, (0, c_pad - c), constant_values=fill)


# ----------------------------------------------------------------------------
# Kernel A: tiled Linear (MXU) + per-tile BN statistics (sum, sum of squares)
# ----------------------------------------------------------------------------

def _linear_stats_kernel(x_ref, w_ref, y_ref, sum_ref, sq_ref, *,
                         total_rows, tm, has_tail):
    w = w_ref[...]
    x = x_ref[...].astype(w.dtype)           # bf16 MXU path when weights are bf16
    y = jnp.dot(x, w, preferred_element_type=jnp.float32)
    y_ref[...] = y

    def _emit(yv):
        sum_ref[0] = jnp.sum(yv, axis=0, keepdims=True)
        sq_ref[0] = jnp.sum(yv * yv, axis=0, keepdims=True)

    if has_tail:
        is_last = pl.program_id(0) == pl.num_programs(0) - 1

        @pl.when(is_last)
        def _():
            row = pl.program_id(0) * tm + jax.lax.broadcasted_iota(
                jnp.int32, (tm, 1), 0)
            _emit(jnp.where(row < total_rows, y, 0.0))

        @pl.when(jnp.logical_not(is_last))
        def _():
            _emit(y)
    else:
        _emit(y)


def pallas_linear_stats(x, w, *, tm=512):
    """y = x @ w (bias absorbed by training-mode BN), plus per-row-tile partial
    (sum, sum_sq) per channel.

    x: (M, K) f32, w: (K, N) f32/bf16 (N a multiple of 128)
    returns y: (M, N) f32, sum: (T, 1, N) f32, sumsq: (T, 1, N) f32.
    """
    M, K = x.shape
    N = w.shape[1]
    tm_eff = _row_tile(M, tm)
    grid = pl.cdiv(M, tm_eff)
    has_tail = (M % tm_eff) != 0

    return pl.pallas_call(
        functools.partial(_linear_stats_kernel, total_rows=M, tm=tm_eff,
                          has_tail=has_tail),
        out_shape=(
            jax.ShapeDtypeStruct((M, N), jnp.float32),
            jax.ShapeDtypeStruct((grid, 1, N), jnp.float32),
            jax.ShapeDtypeStruct((grid, 1, N), jnp.float32),
        ),
        grid=(grid,),
        in_specs=[
            pl.BlockSpec((tm_eff, K), lambda i: (i, 0)),
            pl.BlockSpec((K, N), lambda i: (0, 0)),
        ],
        out_specs=(
            pl.BlockSpec((tm_eff, N), lambda i: (i, 0)),
            pl.BlockSpec((1, 1, N), lambda i: (i, 0, 0)),
            pl.BlockSpec((1, 1, N), lambda i: (i, 0, 0)),
        ),
        compiler_params=pltpu.CompilerParams(
            dimension_semantics=("parallel",),
            vmem_limit_bytes=_VMEM_LIMIT),
    )(x, w)


def bn_fold(sum_stats, sq_stats, n_rows, gamma, beta, eps=1e-5):
    """Fold training-mode BatchNorm1d (batch stats, biased variance) into
    per-channel scale/shift.  Tiny host-side reduce."""
    s = jnp.sum(sum_stats, axis=0).reshape(-1)
    q = jnp.sum(sq_stats, axis=0).reshape(-1)
    mean = s / n_rows
    var = jnp.maximum(q / n_rows - mean * mean, 0.0)
    scale = gamma * jax.lax.rsqrt(var + eps)
    shift = beta - mean * scale
    return scale, shift


# ----------------------------------------------------------------------------
# Kernel B: fused 3-NN gather + inverse-distance interp + BN-affine + ReLU + add
# ----------------------------------------------------------------------------

def _interp_bn_relu_add_kernel(y1_ref, idx_ref, d_ref, y2_ref, ss_ref, o_ref,
                               *, k_nn):
    n1 = y1_ref.shape[1]
    tn = y2_ref.shape[1]

    ss = ss_ref[...]                                      # (4, C)
    s1, t1 = ss[0:1], ss[1:2]
    s2, t2 = ss[2:3], ss[3:4]

    # Fine branch: BN affine + ReLU.
    acc = jnp.maximum(y2_ref[0] * s2 + t2, 0.0)           # (tn, C)

    # Coarse branch: BN affine + ReLU on the per-batch resident block
    # (cheap VPU recompute per tile; block itself is not re-DMA'd).
    f1 = jnp.maximum(y1_ref[0] * s1 + t1, 0.0)            # (N1, C)

    # Exact inverse-distance weights (matches torch 1/(d+1e-8)/sum).
    d = d_ref[0]                                          # (tn, k)
    recip = 1.0 / (d + 1e-8)
    wgt = recip / jnp.sum(recip, axis=1, keepdims=True)

    # Fused gather: build the weighted one-hot interpolation matrix (tn, N1)
    # and do a single MXU matmul against f1.  No (M, k, C) gathered activation
    # ever touches HBM.
    idx = idx_ref[0]                                      # (tn, k) int32
    col = jax.lax.broadcasted_iota(jnp.int32, (tn, n1), 1)
    wmat = jnp.zeros((tn, n1), jnp.float32)
    for kk in range(k_nn):
        wmat = wmat + jnp.where(col == idx[:, kk:kk + 1], wgt[:, kk:kk + 1], 0.0)
    interp = jnp.dot(wmat, f1, preferred_element_type=jnp.float32)

    o_ref[0] = acc + interp


def pallas_interp_bn_relu_add(y1, idx, d3, y2, ss, *, tn=512):
    """y1: (B, N1, C) raw fc1 output (coarse), idx: (B, N2, k) int32 neighbor
    indices, d3: (B, N2, k) squared distances, y2: (B, N2, C) raw fc2 output,
    ss: (4, C) packed [scale1, shift1, scale2, shift2] -> out (B, N2, C)."""
    B, N1, C = y1.shape
    _, N2, k_nn = idx.shape
    tn_eff = _row_tile(N2, tn)
    grid = (B, pl.cdiv(N2, tn_eff))
    # TODO(synk): for very large coarse sets the per-batch (N1, C) resident
    # block may exceed VMEM; a K-tiled variant over N1 would be needed then.
    return pl.pallas_call(
        functools.partial(_interp_bn_relu_add_kernel, k_nn=k_nn),
        out_shape=jax.ShapeDtypeStruct((B, N2, C), jnp.float32),
        grid=grid,
        in_specs=[
            pl.BlockSpec((1, N1, C), lambda b, i: (b, 0, 0)),
            pl.BlockSpec((1, tn_eff, k_nn), lambda b, i: (b, i, 0)),
            pl.BlockSpec((1, tn_eff, k_nn), lambda b, i: (b, i, 0)),
            pl.BlockSpec((1, tn_eff, C), lambda b, i: (b, i, 0)),
            pl.BlockSpec((4, C), lambda b, i: (0, 0)),
        ],
        out_specs=pl.BlockSpec((1, tn_eff, C), lambda b, i: (b, i, 0)),
        compiler_params=pltpu.CompilerParams(
            dimension_semantics=("parallel", "parallel"),
            vmem_limit_bytes=_VMEM_LIMIT),
    )(y1, idx, d3, y2, ss)


# ----------------------------------------------------------------------------
# Plain-JAX glue (pairwise distances, kNN search)
# ----------------------------------------------------------------------------

def square_distance(src, dst):
    # (B, N, 3), (B, M, 3) -> (B, N, M) squared Euclidean distances.
    d = -2.0 * jnp.einsum("bnc,bmc->bnm", src, dst)
    d = d + jnp.sum(src ** 2, axis=-1)[:, :, None]
    d = d + jnp.sum(dst ** 2, axis=-1)[:, None, :]
    return d


# ----------------------------------------------------------------------------
# TransitionUp forward
# ----------------------------------------------------------------------------

def transition_up_forward(params, xyz1, points1, xyz2, points2, *,
                          eps=1e-5, tm=512):
    B, N1, dim1 = points1.shape
    _, N2, dim2 = points2.shape
    C = params["g1"].shape[0]
    C_pad = _round_up(C, _LANE)

    # Pad the channel dim to a lane-dense multiple of 128 so every Pallas block
    # stores with unmasked full-lane vst (padded weight columns are zero so the
    # padded channels stay exactly 0; sliced off once at the very end).
    w1 = _pad_cols(params["w1"], C_pad)
    w2 = _pad_cols(params["w2"], C_pad)
    g1 = _pad_vec(params["g1"], C_pad, 1.0)
    be1 = _pad_vec(params["beta1"], C_pad, 0.0)
    g2 = _pad_vec(params["g2"], C_pad, 1.0)
    be2 = _pad_vec(params["beta2"], C_pad, 0.0)

    # fc1 / fc2 Linear + fused BN batch statistics in one HBM pass each.
    # (Linear bias is absorbed by the training-mode batch-mean subtraction.)
    y1, s1, q1 = pallas_linear_stats(points1.reshape(B * N1, dim1), w1, tm=tm)
    y2, s2, q2 = pallas_linear_stats(points2.reshape(B * N2, dim2), w2, tm=tm)
    scale1, shift1 = bn_fold(s1, q1, B * N1, g1, be1, eps)
    scale2, shift2 = bn_fold(s2, q2, B * N2, g2, be2, eps)
    ss = jnp.stack([scale1, shift1, scale2, shift2], axis=0)   # (4, C_pad)

    # PointNetFeaturePropagation(-1, []): interpolate feats1 (at xyz1, coarse)
    # onto xyz2 (fine) with inverse-distance weights over the 3 nearest coarse
    # points.  k = min(3, N1) also reproduces the S == 1 "repeat" special case.
    # TODO(synk): the kNN search (pairwise distances + top_k) stays in XLA;
    # tie-breaking on equal distances may differ from torch.sort.
    k_nn = min(3, N1)
    dists = square_distance(xyz2, xyz1)                        # (B, N2, N1)
    neg_d, idx = jax.lax.top_k(-dists, k_nn)
    d3 = -neg_d

    # Gather + interpolation + BN-affine + ReLU (both branches) + residual add
    # fused in one kernel; the coarse features stay resident in VMEM per batch.
    out = pallas_interp_bn_relu_add(
        y1.reshape(B, N1, C_pad), idx.astype(jnp.int32), d3,
        y2.reshape(B, N2, C_pad), ss, tn=tm)
    if C_pad != C:
        out = out[..., :C]
    return out


# ----------------------------------------------------------------------------
# Deterministic parameter init (PyTorch-style uniform bounds)
# ----------------------------------------------------------------------------

def init_linear(key, fan_in, fan_out, weight_dtype=jnp.bfloat16):
    k1, k2 = jax.random.split(key)
    bound = 1.0 / math.sqrt(fan_in)
    w = jax.random.uniform(k1, (fan_in, fan_out), jnp.float32, -bound, bound)
    b = jax.random.uniform(k2, (fan_out,), jnp.float32, -bound, bound)
    return w.astype(weight_dtype), b


def init_transition_up(key, dim1, dim2, dim_out, weight_dtype=jnp.bfloat16):
    k1, k2 = jax.random.split(key)
    w1, b1 = init_linear(k1, dim1, dim_out, weight_dtype)
    w2, b2 = init_linear(k2, dim2, dim_out, weight_dtype)
    # TODO(synk): BatchNorm running statistics / eval mode are not tracked;
    # training-mode batch statistics are used (matches a fresh module in
    # train()).  The Linear biases b1/b2 are kept for fidelity but are
    # mathematically absorbed by the batch-mean subtraction and unused.
    return {
        "w1": w1, "b1": b1,
        "g1": jnp.ones((dim_out,), jnp.float32),
        "beta1": jnp.zeros((dim_out,), jnp.float32),
        "w2": w2, "b2": b2,
        "g2": jnp.ones((dim_out,), jnp.float32),
        "beta2": jnp.zeros((dim_out,), jnp.float32),
    }


# ----------------------------------------------------------------------------

if __name__ == "__main__":
    B, N1, N2 = 2, 4, 16                 # coarse / fine point counts
    dim1, dim2, dim_out = 64, 32, 32

    key = jax.random.PRNGKey(0)
    kp, ka, kb, kc, kd = jax.random.split(key, 5)
    params = init_transition_up(kp, dim1, dim2, dim_out)

    xyz1 = jax.random.normal(ka, (B, N1, 3), jnp.float32)
    points1 = jax.random.normal(kb, (B, N1, dim1), jnp.float32)
    xyz2 = jax.random.normal(kc, (B, N2, 3), jnp.float32)
    points2 = jax.random.normal(kd, (B, N2, dim2), jnp.float32)

    fwd = jax.jit(transition_up_forward)
    out = fwd(params, xyz1, points1, xyz2, points2)
    jax.block_until_ready(out)

    assert out.shape == (B, N2, dim_out)
    assert bool(jnp.all(jnp.isfinite(out)))
    print("KERNEL_OK")
</pallas_src>

<mosaic_0001>
module attributes {stable_mosaic.version = 11 : i64} {
  func.func @_linear_stats_kernel(%arg0: i32, %arg1: memref<8x64xf32, #tpu.memory_space<vmem>>, %arg2: memref<64x128xbf16, #tpu.memory_space<vmem>>, %arg3: memref<8x128xf32, #tpu.memory_space<vmem>>, %arg4: memref<1x1x128xf32, #tpu.memory_space<vmem>>, %arg5: memref<1x1x128xf32, #tpu.memory_space<vmem>>) attributes {dimension_semantics = [#tpu.dimension_semantics<parallel>], iteration_bounds = array<i64: 1>, scalar_prefetch = 0 : i64, scratch_operands = 0 : i64, tpu.core_type = #tpu.core_type<tc>, window_params = [{transform_indices = @transform_0, window_bounds = array<i64: 8, 64>}, {pipeline_mode = #tpu.pipeline_mode<synchronous>, transform_indices = @transform_1, window_bounds = array<i64: 64, 128>}, {transform_indices = @transform_2, window_bounds = array<i64: 8, 128>}, {transform_indices = @transform_3, window_bounds = array<i64: 1, 1, 128>}, {transform_indices = @transform_4, window_bounds = array<i64: 1, 1, 128>}]} {
    %c0 = arith.constant 0 : index
    %c0_0 = arith.constant 0 : index
    %0 = vector.load %arg2[%c0, %c0_0] : memref<64x128xbf16, #tpu.memory_space<vmem>>, vector<64x128xbf16>
    %c0_1 = arith.constant 0 : index
    %c0_2 = arith.constant 0 : index
    %1 = vector.load %arg1[%c0_1, %c0_2] : memref<8x64xf32, #tpu.memory_space<vmem>>, vector<8x64xf32>
    %2 = arith.truncf %1 : vector<8x64xf32> to vector<8x64xbf16>
    %cst = arith.constant dense<0.000000e+00> : vector<8x128xf32>
    %3 = tpu.matmul %2, %0, %cst {dimension_numbers = #tpu.dot_dimension_numbers<[1], [0], [0], [1], [0, 0, 1, 1], [], []>} : vector<8x64xbf16>, vector<64x128xbf16>, vector<8x128xf32> -> vector<8x128xf32>
    %c0_3 = arith.constant 0 : index
    %c0_4 = arith.constant 0 : index
    %4 = vector.load %arg3[%c0_3, %c0_4] : memref<8x128xf32, #tpu.memory_space<vmem>>, vector<8x128xf32>
    tpu.vector_store %arg3[%c0_3, %c0_4], %3 {strides = array<i32>} : memref<8x128xf32, #tpu.memory_space<vmem>>, vector<8x128xf32>,
    %cst_5 = arith.constant dense<0.000000e+00> : vector<128xf32>
    %5 = vector.multi_reduction <add>, %3, %cst_5 [0] : vector<8x128xf32> to vector<128xf32>
    %6 = vector.shape_cast %5 : vector<128xf32> to vector<1x128xf32>
    %c0_6 = arith.constant 0 : index
    %c0_7 = arith.constant 0 : index
    %c0_8 = arith.constant 0 : index
    %7 = vector.load %arg4[%c0_6, %c0_7, %c0_8] : memref<1x1x128xf32, #tpu.memory_space<vmem>>, vector<1x1x128xf32>
    %8 = vector.shape_cast %7 : vector<1x1x128xf32> to vector<1x128xf32>
    %9 = vector.shape_cast %6 : vector<1x128xf32> to vector<1x1x128xf32>
    tpu.vector_store %arg4[%c0_6, %c0_7, %c0_8], %9 {strides = array<i32>} : memref<1x1x128xf32, #tpu.memory_space<vmem>>, vector<1x1x128xf32>,
    %10 = arith.mulf %3, %3 : vector<8x128xf32>
    %cst_9 = arith.constant dense<0.000000e+00> : vector<128xf32>
    %11 = vector.multi_reduction <add>, %10, %cst_9 [0] : vector<8x128xf32> to vector<128xf32>
    %12 = vector.shape_cast %11 : vector<128xf32> to vector<1x128xf32>
    %c0_10 = arith.constant 0 : index
    %c0_11 = arith.constant 0 : index
    %c0_12 = arith.constant 0 : index
    %13 = vector.load %arg5[%c0_10, %c0_11, %c0_12] : memref<1x1x128xf32, #tpu.memory_space<vmem>>, vector<1x1x128xf32>
    %14 = vector.shape_cast %13 : vector<1x1x128xf32> to vector<1x128xf32>
    %15 = vector.shape_cast %12 : vector<1x128xf32> to vector<1x1x128xf32>
    tpu.vector_store %arg5[%c0_10, %c0_11, %c0_12], %15 {strides = array<i32>} : memref<1x1x128xf32, #tpu.memory_space<vmem>>, vector<1x1x128xf32>,
    return
  }
  func.func @transform_0(%arg0: i32) -> (i32, i32) {
    %c0_i32 = arith.constant 0 : i32
    %c0_i32_0 = arith.constant 0 : i32
    return %arg0, %c0_i32 : i32, i32
  }
  func.func @transform_1(%arg0: i32) -> (i32, i32) {
    %c0_i32 = arith.constant 0 : i32
    %c0_i32_0 = arith.constant 0 : i32
    %c0_i32_1 = arith.constant 0 : i32
    return %c0_i32, %c0_i32_0 : i32, i32
  }
  func.func @transform_2(%arg0: i32) -> (i32, i32) {
    %c0_i32 = arith.constant 0 : i32
    %c0_i32_0 = arith.constant 0 : i32
    return %arg0, %c0_i32 : i32, i32
  }
  func.func @transform_3(%arg0: i32) -> (i32, i32, i32) {
    %c0_i32 = arith.constant 0 : i32
    %c0_i32_0 = arith.constant 0 : i32
    %c0_i32_1 = arith.constant 0 : i32
    return %arg0, %c0_i32, %c0_i32_0 : i32, i32, i32
  }
  func.func @transform_4(%arg0: i32) -> (i32, i32, i32) {
    %c0_i32 = arith.constant 0 : i32
    %c0_i32_0 = arith.constant 0 : i32
    %c0_i32_1 = arith.constant 0 : i32
    return %arg0, %c0_i32, %c0_i32_0 : i32, i32, i32
  }
}

module attributes {stable_mosaic.version = 11 : i64} {
  func.func @_linear_stats_kernel(%arg0: i32, %arg1: memref<16x32xf32, #tpu.memory_space<vmem>>, %arg2: memref<32x128xbf16, #tpu.memory_space<vmem>>, %arg3: memref<16x128xf32, #tpu.memory_space<vmem>>, %arg4: memref<1x1x128xf32, #tpu.memory_space<vmem>>, %arg5: memref<1x1x128xf32, #tpu.memory_space<vmem>>) attributes {dimension_semantics = [#tpu.dimension_semantics<parallel>], iteration_bounds = array<i64: 2>, scalar_prefetch = 0 : i64, scratch_operands = 0 : i64, tpu.core_type = #tpu.core_type<tc>, window_params = [{transform_indices = @transform_0, window_bounds = array<i64: 16, 32>}, {pipeline_mode = #tpu.pipeline_mode<synchronous>, transform_indices = @transform_1, window_bounds = array<i64: 32, 128>}, {transform_indices = @transform_2, window_bounds = array<i64: 16, 128>}, {transform_indices = @transform_3, window_bounds = array<i64: 1, 1, 128>}, {transform_indices = @transform_4, window_bounds = array<i64: 1, 1, 128>}]} {
    %c0 = arith.constant 0 : index
    %c0_0 = arith.constant 0 : index
    %0 = vector.load %arg2[%c0, %c0_0] : memref<32x128xbf16, #tpu.memory_space<vmem>>, vector<32x128xbf16>
    %c0_1 = arith.constant 0 : index
    %c0_2 = arith.constant 0 : index
    %1 = vector.load %arg1[%c0_1, %c0_2] : memref<16x32xf32, #tpu.memory_space<vmem>>, vector<16x32xf32>
    %2 = arith.truncf %1 : vector<16x32xf32> to vector<16x32xbf16>
    %cst = arith.constant dense<0.000000e+00> : vector<16x128xf32>
    %3 = tpu.matmul %2, %0, %cst {dimension_numbers = #tpu.dot_dimension_numbers<[1], [0], [0], [1], [0, 0, 1, 1], [], []>} : vector<16x32xbf16>, vector<32x128xbf16>, vector<16x128xf32> -> vector<16x128xf32>
    %c0_3 = arith.constant 0 : index
    %c0_4 = arith.constant 0 : index
    %4 = vector.load %arg3[%c0_3, %c0_4] : memref<16x128xf32, #tpu.memory_space<vmem>>, vector<16x128xf32>
    tpu.vector_store %arg3[%c0_3, %c0_4], %3 {strides = array<i32>} : memref<16x128xf32, #tpu.memory_space<vmem>>, vector<16x128xf32>,
    %cst_5 = arith.constant dense<0.000000e+00> : vector<128xf32>
    %5 = vector.multi_reduction <add>, %3, %cst_5 [0] : vector<16x128xf32> to vector<128xf32>
    %6 = vector.shape_cast %5 : vector<128xf32> to vector<1x128xf32>
    %c0_6 = arith.constant 0 : index
    %c0_7 = arith.constant 0 : index
    %c0_8 = arith.constant 0 : index
    %7 = vector.load %arg4[%c0_6, %c0_7, %c0_8] : memref<1x1x128xf32, #tpu.memory_space<vmem>>, vector<1x1x128xf32>
    %8 = vector.shape_cast %7 : vector<1x1x128xf32> to vector<1x128xf32>
    %9 = vector.shape_cast %6 : vector<1x128xf32> to vector<1x1x128xf32>
    tpu.vector_store %arg4[%c0_6, %c0_7, %c0_8], %9 {strides = array<i32>} : memref<1x1x128xf32, #tpu.memory_space<vmem>>, vector<1x1x128xf32>,
    %10 = arith.mulf %3, %3 : vector<16x128xf32>
    %cst_9 = arith.constant dense<0.000000e+00> : vector<128xf32>
    %11 = vector.multi_reduction <add>, %10, %cst_9 [0] : vector<16x128xf32> to vector<128xf32>
    %12 = vector.shape_cast %11 : vector<128xf32> to vector<1x128xf32>
    %c0_10 = arith.constant 0 : index
    %c0_11 = arith.constant 0 : index
    %c0_12 = arith.constant 0 : index
    %13 = vector.load %arg5[%c0_10, %c0_11, %c0_12] : memref<1x1x128xf32, #tpu.memory_space<vmem>>, vector<1x1x128xf32>
    %14 = vector.shape_cast %13 : vector<1x1x128xf32> to vector<1x128xf32>
    %15 = vector.shape_cast %12 : vector<1x128xf32> to vector<1x1x128xf32>
    tpu.vector_store %arg5[%c0_10, %c0_11, %c0_12], %15 {strides = array<i32>} : memref<1x1x128xf32, #tpu.memory_space<vmem>>, vector<1x1x128xf32>,
    return
  }
  func.func @transform_0(%arg0: i32) -> (i32, i32) {
    %c0_i32 = arith.constant 0 : i32
    %c0_i32_0 = arith.constant 0 : i32
    return %arg0, %c0_i32 : i32, i32
  }
  func.func @transform_1(%arg0: i32) -> (i32, i32) {
    %c0_i32 = arith.constant 0 : i32
    %c0_i32_0 = arith.constant 0 : i32
    %c0_i32_1 = arith.constant 0 : i32
    return %c0_i32, %c0_i32_0 : i32, i32
  }
  func.func @transform_2(%arg0: i32) -> (i32, i32) {
    %c0_i32 = arith.constant 0 : i32
    %c0_i32_0 = arith.constant 0 : i32
    return %arg0, %c0_i32 : i32, i32
  }
  func.func @transform_3(%arg0: i32) -> (i32, i32, i32) {
    %c0_i32 = arith.constant 0 : i32
    %c0_i32_0 = arith.constant 0 : i32
    %c0_i32_1 = arith.constant 0 : i32
    return %arg0, %c0_i32, %c0_i32_0 : i32, i32, i32
  }
  func.func @transform_4(%arg0: i32) -> (i32, i32, i32) {
    %c0_i32 = arith.constant 0 : i32
    %c0_i32_0 = arith.constant 0 : i32
    %c0_i32_1 = arith.constant 0 : i32
    return %arg0, %c0_i32, %c0_i32_0 : i32, i32, i32
  }
}

module attributes {stable_mosaic.version = 11 : i64} {
  func.func @_interp_bn_relu_add_kernel(%arg0: i32, %arg1: i32, %arg2: memref<1x4x128xf32, #tpu.memory_space<vmem>>, %arg3: memref<1x8x3xi32, #tpu.memory_space<vmem>>, %arg4: memref<1x8x3xf32, #tpu.memory_space<vmem>>, %arg5: memref<1x8x128xf32, #tpu.memory_space<vmem>>, %arg6: memref<4x128xf32, #tpu.memory_space<vmem>>, %arg7: memref<1x8x128xf32, #tpu.memory_space<vmem>>) attributes {dimension_semantics = [#tpu.dimension_semantics<parallel>, #tpu.dimension_semantics<parallel>], iteration_bounds = array<i64: 2, 2>, scalar_prefetch = 0 : i64, scratch_operands = 0 : i64, tpu.core_type = #tpu.core_type<tc>, window_params = [{transform_indices = @transform_0, window_bounds = array<i64: 1, 4, 128>}, {transform_indices = @transform_1, window_bounds = array<i64: 1, 8, 3>}, {transform_indices = @transform_2, window_bounds = array<i64: 1, 8, 3>}, {transform_indices = @transform_3, window_bounds = array<i64: 1, 8, 128>}, {pipeline_mode = #tpu.pipeline_mode<synchronous>, transform_indices = @transform_4, window_bounds = array<i64: 4, 128>}, {transform_indices = @transform_5, window_bounds = array<i64: 1, 8, 128>}]} {
    %c0 = arith.constant 0 : index
    %c0_0 = arith.constant 0 : index
    %0 = vector.load %arg6[%c0, %c0_0] : memref<4x128xf32, #tpu.memory_space<vmem>>, vector<4x128xf32>
    %1 = vector.extract_strided_slice %0 {offsets = [0, 0], sizes = [1, 128], strides = [1, 1]} : vector<4x128xf32> to vector<1x128xf32>
    %2 = vector.extract_strided_slice %0 {offsets = [1, 0], sizes = [1, 128], strides = [1, 1]} : vector<4x128xf32> to vector<1x128xf32>
    %3 = vector.extract_strided_slice %0 {offsets = [2, 0], sizes = [1, 128], strides = [1, 1]} : vector<4x128xf32> to vector<1x128xf32>
    %4 = vector.extract_strided_slice %0 {offsets = [3, 0], sizes = [1, 128], strides = [1, 1]} : vector<4x128xf32> to vector<1x128xf32>
    %c0_1 = arith.constant 0 : index
    %c0_2 = arith.constant 0 : index
    %c0_3 = arith.constant 0 : index
    %5 = vector.load %arg5[%c0_1, %c0_2, %c0_3] : memref<1x8x128xf32, #tpu.memory_space<vmem>>, vector<1x8x128xf32>
    %6 = vector.shape_cast %5 : vector<1x8x128xf32> to vector<8x128xf32>
    %7 = vector.broadcast %3 : vector<1x128xf32> to vector<8x128xf32>
    %8 = arith.mulf %6, %7 : vector<8x128xf32>
    %9 = vector.broadcast %4 : vector<1x128xf32> to vector<8x128xf32>
    %10 = arith.addf %8, %9 : vector<8x128xf32>
    %cst = arith.constant 0.000000e+00 : f32
    %11 = vector.broadcast %cst : f32 to vector<8x128xf32>
    %12 = arith.maximumf %10, %11 : vector<8x128xf32>
    %c0_4 = arith.constant 0 : index
    %c0_5 = arith.constant 0 : index
    %c0_6 = arith.constant 0 : index
    %13 = vector.load %arg2[%c0_4, %c0_5, %c0_6] : memref<1x4x128xf32, #tpu.memory_space<vmem>>, vector<1x4x128xf32>
    %14 = vector.shape_cast %13 : vector<1x4x128xf32> to vector<4x128xf32>
    %15 = vector.broadcast %1 : vector<1x128xf32> to vector<4x128xf32>
    %16 = arith.mulf %14, %15 : vector<4x128xf32>
    %17 = vector.broadcast %2 : vector<1x128xf32> to vector<4x128xf32>
    %18 = arith.addf %16, %17 : vector<4x128xf32>
    %cst_7 = arith.constant 0.000000e+00 : f32
    %19 = vector.broadcast %cst_7 : f32 to vector<4x128xf32>
    %20 = arith.maximumf %18, %19 : vector<4x128xf32>
    %c0_8 = arith.constant 0 : index
    %c0_9 = arith.constant 0 : index
    %c0_10 = arith.constant 0 : index
    %21 = vector.load %arg4[%c0_8, %c0_9, %c0_10] : memref<1x8x3xf32, #tpu.memory_space<vmem>>, vector<1x8x3xf32>
    %22 = vector.shape_cast %21 : vector<1x8x3xf32> to vector<8x3xf32>
    %cst_11 = arith.constant 9.99999993E-9 : f32
    %23 = vector.broadcast %cst_11 : f32 to vector<8x3xf32>
    %24 = arith.addf %22, %23 : vector<8x3xf32>
    %cst_12 = arith.constant 1.000000e+00 : f32
    %25 = vector.broadcast %cst_12 : f32 to vector<8x3xf32>
    %26 = arith.divf %25, %24 : vector<8x3xf32>
    %cst_13 = arith.constant dense<0.000000e+00> : vector<8xf32>
    %27 = vector.multi_reduction <add>, %26, %cst_13 [1] : vector<8x3xf32> to vector<8xf32>
    %28 = vector.shape_cast %27 : vector<8xf32> to vector<8x1xf32>
    %29 = vector.broadcast %28 : vector<8x1xf32> to vector<8x3xf32>
    %30 = arith.divf %26, %29 : vector<8x3xf32>
    %c0_14 = arith.constant 0 : index
    %c0_15 = arith.constant 0 : index
    %c0_16 = arith.constant 0 : index
    %31 = vector.load %arg3[%c0_14, %c0_15, %c0_16] : memref<1x8x3xi32, #tpu.memory_space<vmem>>, vector<1x8x3xi32>
    %32 = vector.shape_cast %31 : vector<1x8x3xi32> to vector<8x3xi32>
    %33 = tpu.iota {dimensions = array<i32: 1>} : vector<8x4xi32>
    %cst_17 = arith.constant 0.000000e+00 : f32
    %34 = vector.broadcast %cst_17 : f32 to vector<8x4xf32>
    %35 = vector.extract_strided_slice %32 {offsets = [0, 0], sizes = [8, 1], strides = [1, 1]} : vector<8x3xi32> to vector<8x1xi32>
    %36 = vector.broadcast %35 : vector<8x1xi32> to vector<8x4xi32>
    %37 = arith.cmpi eq, %33, %36 : vector<8x4xi32>
    %38 = vector.extract_strided_slice %30 {offsets = [0, 0], sizes = [8, 1], strides = [1, 1]} : vector<8x3xf32> to vector<8x1xf32>
    %cst_18 = arith.constant 0.000000e+00 : f32
    %39 = vector.shape_cast %38 : vector<8x1xf32> to vector<8x1xf32>
    %40 = vector.broadcast %39 : vector<8x1xf32> to vector<8x4xf32>
    %41 = vector.broadcast %cst_18 : f32 to vector<8x4xf32>
    %42 = arith.select %37, %40, %41 : vector<8x4xi1>, vector<8x4xf32>
    %43 = arith.addf %34, %42 : vector<8x4xf32>
    %44 = vector.extract_strided_slice %32 {offsets = [0, 1], sizes = [8, 1], strides = [1, 1]} : vector<8x3xi32> to vector<8x1xi32>
    %45 = vector.broadcast %44 : vector<8x1xi32> to vector<8x4xi32>
    %46 = arith.cmpi eq, %33, %45 : vector<8x4xi32>
    %47 = vector.extract_strided_slice %30 {offsets = [0, 1], sizes = [8, 1], strides = [1, 1]} : vector<8x3xf32> to vector<8x1xf32>
    %cst_19 = arith.constant 0.000000e+00 : f32
    %48 = vector.shape_cast %47 : vector<8x1xf32> to vector<8x1xf32>
    %49 = vector.broadcast %48 : vector<8x1xf32> to vector<8x4xf32>
    %50 = vector.broadcast %cst_19 : f32 to vector<8x4xf32>
    %51 = arith.select %46, %49, %50 : vector<8x4xi1>, vector<8x4xf32>
    %52 = arith.addf %43, %51 : vector<8x4xf32>
    %53 = vector.extract_strided_slice %32 {offsets = [0, 2], sizes = [8, 1], strides = [1, 1]} : vector<8x3xi32> to vector<8x1xi32>
    %54 = vector.broadcast %53 : vector<8x1xi32> to vector<8x4xi32>
    %55 = arith.cmpi eq, %33, %54 : vector<8x4xi32>
    %56 = vector.extract_strided_slice %30 {offsets = [0, 2], sizes = [8, 1], strides = [1, 1]} : vector<8x3xf32> to vector<8x1xf32>
    %cst_20 = arith.constant 0.000000e+00 : f32
    %57 = vector.shape_cast %56 : vector<8x1xf32> to vector<8x1xf32>
    %58 = vector.broadcast %57 : vector<8x1xf32> to vector<8x4xf32>
    %59 = vector.broadcast %cst_20 : f32 to vector<8x4xf32>
    %60 = arith.select %55, %58, %59 : vector<8x4xi1>, vector<8x4xf32>
    %61 = arith.addf %52, %60 : vector<8x4xf32>
    %cst_21 = arith.constant dense<0.000000e+00> : vector<8x128xf32>
    %62 = tpu.matmul %61, %20, %cst_21 {dimension_numbers = #tpu.dot_dimension_numbers<[1], [0], [0], [1], [0, 0, 1, 1], [], []>} : vector<8x4xf32>, vector<4x128xf32>, vector<8x128xf32> -> vector<8x128xf32>
    %63 = arith.addf %12, %62 : vector<8x128xf32>
    %c0_22 = arith.constant 0 : index
    %c0_23 = arith.constant 0 : index
    %c0_24 = arith.constant 0 : index
    %64 = vector.load %arg7[%c0_22, %c0_23, %c0_24] : memref<1x8x128xf32, #tpu.memory_space<vmem>>, vector<1x8x128xf32>
    %65 = vector.shape_cast %64 : vector<1x8x128xf32> to vector<8x128xf32>
    %66 = vector.shape_cast %63 : vector<8x128xf32> to vector<1x8x128xf32>
    tpu.vector_store %arg7[%c0_22, %c0_23, %c0_24], %66 {strides = array<i32>} : memref<1x8x128xf32, #tpu.memory_space<vmem>>, vector<1x8x128xf32>,
    return
  }
  func.func @transform_0(%arg0: i32, %arg1: i32) -> (i32, i32, i32) {
    %c0_i32 = arith.constant 0 : i32
    %c0_i32_0 = arith.constant 0 : i32
    %c0_i32_1 = arith.constant 0 : i32
    return %arg0, %c0_i32, %c0_i32_0 : i32, i32, i32
  }
  func.func @transform_1(%arg0: i32, %arg1: i32) -> (i32, i32, i32) {
    %c0_i32 = arith.constant 0 : i32
    %c0_i32_0 = arith.constant 0 : i32
    return %arg0, %arg1, %c0_i32 : i32, i32, i32
  }
  func.func @transform_2(%arg0: i32, %arg1: i32) -> (i32, i32, i32) {
    %c0_i32 = arith.constant 0 : i32
    %c0_i32_0 = arith.constant 0 : i32
    return %arg0, %arg1, %c0_i32 : i32, i32, i32
  }
  func.func @transform_3(%arg0: i32, %arg1: i32) -> (i32, i32, i32) {
    %c0_i32 = arith.constant 0 : i32
    %c0_i32_0 = arith.constant 0 : i32
    return %arg0, %arg1, %c0_i32 : i32, i32, i32
  }
  func.func @transform_4(%arg0: i32, %arg1: i32) -> (i32, i32) {
    %c0_i32 = arith.constant 0 : i32
    %c0_i32_0 = arith.constant 0 : i32
    %c0_i32_1 = arith.constant 0 : i32
    return %c0_i32, %c0_i32_0 : i32, i32
  }
  func.func @transform_5(%arg0: i32, %arg1: i32) -> (i32, i32, i32) {
    %c0_i32 = arith.constant 0 : i32
    %c0_i32_0 = arith.constant 0 : i32
    return %arg0, %arg1, %c0_i32 : i32, i32, i32
  }
}

</mosaic_0001>

<bundles_post_ra>
// kernel: transition_up_forward.3
= control target key start
LH: loop header
LB: loop body
LE: loop exit
PB: predicated region body
PF: predicated region fallthrough
CT: control target
= control target key end

     0   :  { %vm49_vm0 = vcmask 523264   ;;  %s164_s1 = inlined_call_operand.vmem [shape: bf16[64,128], index: 1, kind: input, shape index: {}]   ;;  %s165_s0 = inlined_call_operand.vmem [shape: f32[8,64], index: 0, kind: input, shape index: {}]   ;;  %s166_s2 = inlined_call_operand.vmem [shape: f32[8,128], index: 2, kind: output, shape index: {0}]   ;;  %s167_s3 = inlined_call_operand.vmem [shape: f32[1,1,128], index: 3, kind: output, shape index: {1}]   ;;  %s168_s4 = inlined_call_operand.vmem [shape: f32[1,1,128], index: 4, kind: output, shape index: {2}]  }
   0x1   :  { %v114_v0 = vld [vmem:[%s164_s1 + $0x18] sm:$0xff]  ;;  %v113_v1 = vld [vmem:[%s164_s1 + $0x10] sm:$0xff]  ;;  %v112_v2 = vld [vmem:[%s164_s1 + $0x8] sm:$0xff] }
   0x2   :  { %57 = vmatpush.bf16.msra.mxu0 %v114_v0  ;;  %v111_v3 = vld [vmem:[%s164_s1] sm:$0xff] }
   0x3   :  { %v23_v4 = vld [vmem:[%s165_s0] sm:$0xff] }
   0x4   :  { %v24_v5 = vpack.c.bf16 %v23_v4, %v23_v4 }
   0x6   :  { %58 = vmatpush.bf16.msra.mxu0 %v113_v1 }
   0xa   :  { %59 = vmatpush.bf16.msra.mxu0 %v112_v2 }
   0xe   :  { %60 = vmatpush.bf16.msra.mxu0 %v111_v3 }
  0x11   :  { %110 = vmatmul.msk.bf16.vlgmr.msra.gmra.mxu0 %vm49_vm0, %v24_v5 }
  0x8e   :  { %v62_v6 = vpop.f32.mrf.mxu0 }
  0x8f   :  { %66 = vst [vmem:[%s166_s2] sm:$0xff] %v62_v6  ;;  %v67_v7 = vrot.slane %v62_v6, 4  ;;  %v74_v8 = vmul.f32 %v62_v6, %v62_v6 }
  0x91   :  { %v68_v9 = vadd.f32 %v67_v7, %v62_v6  ;;  %v75_v10 = vrot.slane %v74_v8, 4 }
  0x93   :  { %v69_v11 = vrot.slane %v68_v9, 2  ;;  %v76_v12 = vadd.f32 %v75_v10, %v74_v8 }
  0x95   :  { %v70_v13 = vadd.f32 %v69_v11, %v68_v9  ;;  %v77_v14 = vrot.slane %v76_v12, 2 }
  0x96   :  { %v64_v15 = vpop.f32.mrf.mxu0 }
  0x97   :  { %v71_v16 = vrot.slane %v70_v13, 1  ;;  %v78_v17 = vadd.f32 %v77_v14, %v76_v12 }
  0x99   :  { %v72_v18 = vadd.f32 %v71_v16, %v70_v13  ;;  %v79_v19 = vrot.slane %v78_v17, 1 }
  0x9b   :  { %73 = vst [vmem:[%s167_s3] sm:$0x1] %v72_v18  ;;  %v80_v20 = vadd.f32 %v79_v19, %v78_v17 }
  0x9d   :  { %81 = vst [vmem:[%s168_s4] sm:$0x1] %v80_v20 }

// kernel: transition_up_forward.4
= control target key start
LH: loop header
LB: loop body
LE: loop exit
PB: predicated region body
PF: predicated region fallthrough
CT: control target
= control target key end

     0   :  { %s445_s15 = smov 0   ;;  %s479_s0 = inlined_call_operand.vmem [shape: f32[32,32], index: 0, kind: input, shape index: {}]   ;;  %s480_s1 = inlined_call_operand.vmem [shape: bf16[32,128], index: 1, kind: input, shape index: {}]   ;;  %s481_s2 = inlined_call_operand.vmem [shape: f32[32,128], index: 2, kind: output, shape index: {0}]   ;;  %s482_s3 = inlined_call_operand.vmem [shape: f32[2,1,128], index: 3, kind: output, shape index: {1}]   ;;  %s483_s4 = inlined_call_operand.vmem [shape: f32[2,1,128], index: 4, kind: output, shape index: {2}]  }
   0x1 LB: > { %s451_s16 = sadd.s32 4294967295, %s418_s15   ;;  %p386_p0 = scmp.ge.s32.totalorder %s418_s15, 1  ;;  %s418_s15 = sphi %s445_s15, %s15_s15  }
   0x2   : > { %p168_p1 = scmp.lt.s32.totalorder %s418_s15, 3 }
   0x4   : > { %p169_p2 = pnand %p386_p0, %p168_p1 }
   0x5   : > { %s387_s19 = sshll.u32 (!%p169_p2), %s451_s16, 1  ;;  %p212_p4 = scmp.lt.s32.totalorder (!%p169_p2), %s451_s16, 1 }
   0x6   : > { %172 = sbr.rel (%p169_p2) target bundleno = 170 (0xaa), region = 28  ;;  %p201_p3 = scmp.lt.s32.totalorder (!%p169_p2), %s387_s19, 3 }
   0xb   : > { %v403_v0 = vld [vmem:[%s480_s1 + $0x8] sm:$0xff]  ;;  %v402_v1 = vld [vmem:[%s480_s1] sm:$0xff]  ;;  %s485_s19 = smov (!%p201_p3, %s387_s19), 3  ;;  %vm238_vm0 = vcmask 261120   ;;  %s487_s16 = smov (!%p212_p4, %s451_s16), 1 }
   0xc   : > { %248 = vmatpush.bf16.msra.mxu0 %v403_v0  ;;  %s388_s22 = sshll.u32 %s485_s19, 3  ;;  %s214_s5 = scalar_lea.vmem %s482_s3, %s487_s16 }
   0xd   : > { %s204_s25 = scalar_lea.vmem %s479_s0, %s388_s22  ;;  %s210_s28 = scalar_lea.vmem %s481_s2, %s388_s22 }
   0xe   : > { %v223_v2 = vld [vmem:[%s204_s25] sm:$0xff]  ;;  %v224_v3 = vld [vmem:[%s204_s25 + $0x8] sm:$0xff]  ;;  %s217_s8 = scalar_lea.vmem %s483_s4, %s487_s16 }
   0xf   : > { %v225_v4 = vpack.c.bf16 %v224_v3, %v223_v2 }
  0x10   : > { %249 = vmatpush.bf16.msra.mxu0 %v402_v1 }
  0x13   : > { %399 = vmatmul.msk.bf16.vlgmr.msra.gmra.mxu0 %vm238_vm0, %v225_v4 }
  0x90   : > { %v251_v5 = vpop.f32.mrf.mxu0 }
  0x91   : > { %256 = vst [vmem:[%s210_s28] sm:$0xff] %v251_v5  ;;  %v266_v7 = vmul.f32 %v251_v5, %v251_v5 }
  0x98   : > { %v253_v6 = vpop.f32.mrf.mxu0 }
  0x99   : > { %257 = vst [vmem:[%s210_s28 + $0x8] sm:$0xff] %v253_v6  ;;  %v258_v8 = vadd.f32 %v253_v6, %v251_v5  ;;  %v267_v9 = vmul.f32 %v253_v6, %v253_v6 }
  0x9b   : > { %v259_v10 = vrot.slane %v258_v8, 4  ;;  %v268_v11 = vadd.f32 %v267_v9, %v266_v7 }
  0x9d   : > { %v260_v12 = vadd.f32 %v259_v10, %v258_v8  ;;  %v269_v13 = vrot.slane %v268_v11, 4 }
  0x9f   : > { %v261_v14 = vrot.slane %v260_v12, 2  ;;  %v270_v15 = vadd.f32 %v269_v13, %v268_v11 }
  0xa1   : > { %v262_v16 = vadd.f32 %v261_v14, %v260_v12  ;;  %v271_v17 = vrot.slane %v270_v15, 2 }
  0xa3   : > { %v263_v18 = vrot.slane %v262_v16, 1  ;;  %v272_v19 = vadd.f32 %v271_v17, %v270_v15 }
  0xa5   : > { %v264_v20 = vadd.f32 %v263_v18, %v262_v16  ;;  %v273_v21 = vrot.slane %v272_v19, 1 }
  0xa7   : > { %265 = vst [vmem:[%s214_s5] sm:$0x1] %v264_v20  ;;  %v274_v22 = vadd.f32 %v273_v21, %v272_v19 }
  0xa9   : > { %275 = vst [vmem:[%s217_s8] sm:$0x1] %v274_v22 }
  0xaa PF: > { %s15_s15 = sadd.s32 1, %s418_s15  }
  0xab   : > { %p12_p5 = scmp.ge.s32.totalorder %s15_s15, 4  }
  0xad   :  { %14 = sbr.rel (!%p12_p5) target bundleno = 1 (0x1), region = 82 }

// kernel: transition_up_forward.5
= control target key start
LH: loop header
LB: loop body
LE: loop exit
PB: predicated region body
PF: predicated region fallthrough
CT: control target
= control target key end

     0   :  { %s961_s0 = inlined_call_operand.vmem [shape: f32[2,4,128], index: 0, kind: input, shape index: {}]   ;;  %s962_s1 = inlined_call_operand.vmem [shape: s32[2,16,3], index: 1, kind: input, shape index: {}]   ;;  %s963_s2 = inlined_call_operand.vmem [shape: f32[2,16,3], index: 2, kind: input, shape index: {}]   ;;  %s964_s3 = inlined_call_operand.vmem [shape: f32[2,16,128], index: 3, kind: input, shape index: {}]   ;;  %s965_s4 = inlined_call_operand.vmem [shape: f32[4,128], index: 4, kind: input, shape index: {}]   ;;  %s966_s5 = inlined_call_operand.hbm [shape: f32[2,16,128], index: 5, kind: output, shape index: {}]  }
   0x1   :  { %967 = sst [smem:[#allocation5_spill]] %s961_s0 }
   0x2   :  { %968 = sst [smem:[#allocation6_spill]] %s962_s1 }
   0x3   :  { %10 = vsyncpa [#allocation3], 0 }
   0x4   :  { %12 = vsyncpa [#allocation3 + $0x1], 0  ;;  %s818_s18 = smov 0   ;;  %s820_s19 = smov 0  }
   0x5   :  { %s822_s20 = smov 0   ;;  %s824_s21 = smov 0  }
   0x6   :  { %s826_s22 = smov 0   ;;  %s828_s23 = smov 0  }
   0x7   :  { %s830_s24 = smov 0   ;;  %s832_s25 = smov 0  }
   0x8 LB: > { %s584_s26 = sadd.s32 4294967295, %s783_s25   ;;  %s585_s27 = sadd.s32 4294967294, %s783_s25   ;;  %s783_s25 = sphi %s832_s25, %s18_s25   ;;  %s779_s24 = sphi %s830_s24, %s979_s24   ;;  %s775_s23 = sphi %s828_s23, %s978_s23   ;;  %s771_s22 = sphi %s826_s22, %s977_s22   ;;  %s767_s21 = sphi %s824_s21, %s976_s21   ;;  %s763_s20 = sphi %s822_s20, %s975_s20   ;;  %s759_s19 = sphi %s820_s19, %s974_s19   ;;  %s755_s18 = sphi %s818_s18, %s973_s18  }
   0x9   : > { %s27_s28 = sadd.s32 1, %s775_s23  ;;  %s30_s29 = sadd.s32 1, %s779_s24 }
   0xa   : > { %p28_p0 = scmp.ge.s32.totalorder %s27_s28, 2  ;;  %p180_p1 = scmp.ne.s32.totalorder %s763_s20, %s759_s19 }
   0xb   : > { %p181_p2 = scmp.eq.s32.totalorder %s584_s26, 3  ;;  %p186_p5 = scmp.ne.s32.totalorder %s759_s19, %s755_s18 }
   0xc   : > { %s981_s28 = smov (%p28_p0, %s27_s28), 0  ;;  %s983_s29 = smov (!%p28_p0, %s30_s29), %s779_s24 }
   0xd   : > { %s166_s30 = ssub.s32 %s775_s23, %s981_s28  ;;  %p869_p3 = por %p181_p2, %p180_p1 }
   0xe   : > { %p32_p4 = scmp.ge.s32.totalorder %s983_s29, 2  ;;  %p187_p6 = scmp.eq.s32.totalorder %s585_s27, 3 }
   0xf   : > { %p588_p7 = scmp.ge.s32.totalorder %s783_s25, 1  ;;  %p248_p9 = scmp.lt.s32.totalorder %s783_s25, 5 }
  0x10   : > { %s985_s29 = smov (%p32_p4, %s983_s29), 0  ;;  %p878_p8 = por %p187_p6, %p186_p5 }
  0x11   : > { %s165_s8 = ssub.s32 %s779_s24, %s985_s29  ;;  %s170_s9 = sadd.s32 1, %s763_s20 }
  0x12   : > { %s167_s10 = sor.u32 %s166_s30, %s165_s8  ;;  %p249_p10 = pnand %p588_p7, %p248_p9 }
  0x13   : > { %p168_p11 = scmp.eq.s32.totalorder %s167_s10, 0  ;;  %p299_p12 = scmp.lt.s32.totalorder (!%p249_p10), %s771_s22, 1 }
  0x14   : > { %252 = sbr.rel (%p249_p10) target bundleno = 445 (0x1bd), region = 40  ;;  %p305_p13 = scmp.lt.s32.totalorder (!%p249_p10), %s767_s21, 1 }
  0x15   : > { %s887_s11 = scalar_select %p168_p11, %s763_s20, %s170_s9  }
  0x16   : > { %s971_s1 = sld [smem:[#allocation6_spill]] (!%p249_p10)  ;;  %s600_s8 = sshll.u32 (!%p249_p10), %s771_s22, 1 }
  0x17   : > { %s972_s0 = sld [smem:[#allocation5_spill]] (!%p249_p10) }
  0x19   : > { %v785_v0 = vmov 1   ;;  %s892_s12 = scalar_select %p299_p12, %s771_s22, 1  ;;  %vm357_vm4 = vcmask 23552   ;;  %v786_v15 = vmov 0   ;;  %v787_v16 = vmov 2  }
  0x1a   : > { %679 = vset.pattern.permute.xlu1 %v785_v0  ;;  %681 = vset.pattern.permute.xlu2 %v785_v0  ;;  %s306_s13 = scalar_select %p305_p13, %s767_s21, 1  ;;  %v327_v29 = vld [vmem:[%s965_s4] sm:$0xf]  ;;  %vm414_vm9 = vcmask 1043456   ;;  %v377_v38 = vlaneseq  ;;  %vm410_vm13 = vcmask 31744  }
  0x1b   : > { %s591_s14 = sshll.u32 %s892_s12, 1  ;;  %678 = vset.pattern.permute.xlu0 %v786_v15  ;;  %s590_s10 = sshll.u32 %s892_s12, 2  ;;  %v335_v30 = vperm.slane %v327_v29, 0  ;;  %v337_v33 = vperm.slane %v327_v29, 1  ;;  %v329_v49 = vperm.slane %v327_v29, 2  ;;  %v331_v52 = vperm.slane %v327_v29, 3 }
  0x1c   : > { %s308_s15 = sadd.s32 %s591_s14, %s306_s13  ;;  %v378_v41 = vand.u32 127, %v377_v38 }
  0x1d   : > { %s896_s16 = sshll.u32 %s308_s15, 3  ;;  %s302_s15 = scalar_lea.vmem %s972_s0, %s590_s10 }
  0x1e   : > { %s318_s27 = scalar_lea.vmem %s963_s2, %s896_s16  ;;  %s310_s9 = scalar_lea.vmem %s971_s1, %s896_s16  ;;  %v334_v31 = vld [vmem:[%s302_s15] sm:$0xf] }
  0x1f   : > { %v340_v1 = vld [vmem:[%s318_s27] sm:$0xff]  ;;  %v336_v32 = vmul.f32 %v335_v30, %v334_v31  ;;  %s326_s30 = scalar_lea.vmem %s964_s3, %s896_s16  ;;  %s451_s10 = sadd.s32 %s767_s21, %s600_s8 }
  0x20   : > { %v376_v2 = vld [vmem:[%s310_s9] sm:$0xff]  ;;  %v341_v3 = vadd.f32 1e-08, %v340_v1  ;;  %s296_s9 = sand.u32 1, %s759_s19   ;;  %s601_s14 = sshll.u32 %s451_s10, 3 }
  0x21   : > { %391 = vperm.xlu1 %679, %v376_v2   ;;  %v338_v34 = vadd.f32 %v337_v33, %v336_v32  ;;  %v328_v50 = vld [vmem:[%s326_s30] sm:$0xff]  ;;  %s589_s13 = sshll.u32 %s296_s9, 3  ;;  %s453_s26 = scalar_lea.hbm %s966_s5, %s601_s14 }
  0x22   : > { %685 = vrcp.f32 %v341_v3  ;;  %v353_v6 = vand.u32 2147483648, %v341_v3  ;;  %vm347_vm0 = vweird.f32 %v341_v3  ;;  %v351_v8 = vand.u32 2147483647, %v341_v3  ;;  %s298_s0 = scalar_lea.vmem [#allocation2], %s589_s13  ;;  %s457_s12 = sshll.u32 %s453_s26, 4  ;;  %s458_s12 = int_to_ptr.hbm [resolvable:$true] %s457_s12 }
  0x23   : > { %v339_v35 = vmax.f32 %v338_v34, 0.0  ;;  %v330_v51 = vmul.f32 %v329_v49, %v328_v50  ;;  %s455_s1 = sshll.u32 %s298_s0, 4  ;;  %s441_s22 = scalar_lea.sflag [#allocation3], %s296_s9  ;;  %s456_s1 = int_to_ptr.vmem [resolvable:$true] %s455_s1 }
  0x24   : > { %v354_v10 = vor.u32 1.1754944e-38, %v353_v6  ;;  %vm352_vm3 = vcmp.eq.f32.partialorder %v351_v8, 8.507059e+37  ;;  %s703_s16 = sshra.s32 %s458_s12, 4  ;;  %s709_s8 = scalar_lea.hbm %s966_s5, 32  ;;  %s704_s16 = int_to_ptr.hbm [resolvable:$true] %s703_s16 }
  0x25   : > { %597 = vmatpush.msk.msra.mxu0 %vm414_vm9, %v339_v35  ;;  %v332_v53 = vadd.f32 %v331_v52, %v330_v51  ;;  %s705_s21 = scalar_lea.hbm %s704_s16, 8  ;;  %p710_p4 = scmp.lt.s32.totalorder %s704_s16, %s966_s5 }
  0x26   : > { %p706_p0 = scmp.ne.s32.totalorder %s704_s16, %s705_s21  ;;  %p711_p5 = scmp.lt.s32.totalorder %s709_s8, %s705_s21 }
  0x27   : > { %v333_v54 = vmax.f32 %v332_v53, 0.0 }
  0x28   : > { %v686_v4 = vpop.eup %685  ;;  %p707_p1 = pnand %p706_p0, %p869_p3  ;;  %p712_p6 = por %p711_p5, %p710_p4 }
  0x29   : > { %v343_v5 = vmul.f32 %v686_v4, %v341_v3  ;;  %vm348_vm1 = vweird.f32 %v686_v4  ;;  %680 = vset.pattern.permute.xlu1 %v786_v15 }
  0x2a   : > { %vm349_vm2 = vmor %vm347_vm0, %vm348_vm1  ;;  %p708_p2 = pneg %p707_p1 }
  0x2b   : > { %v344_v7 = vsub.f32 1.0, %v343_v5 }
  0x2c   : > { %p713_p7 = pnand %p712_p6, %p708_p2 }
  0x2d   : > { %v345_v9 = vmul.f32 %v686_v4, %v344_v7 }
  0x2f   : > { %v346_v11 = vadd.f32 %v686_v4, %v345_v9 }
  0x31   : > { %v350_v12 = vsel %vm349_vm2, %v686_v4, %v346_v11 }
  0x32   : > { %v355_v13 = vsel %vm352_vm3, %v354_v10, %v350_v12 }
  0x33   : > { %v358_v14 = vsel %vm357_vm4, %v355_v13, 0.0 }
  0x34   : > { %359 = vadd.xlane.f32.xlu0 %v358_v14 }
  0x48   : > { %380 = vperm.xlu0 %678, %v376_v2  }
  0x50   : > { %684 = vset.pattern.permute.xlu0 %v787_v16 }
  0x93   : > { %v392_v36 = vpop.permute.xlu1 %391 }
  0x94   : > { %vm393_vm11 = vcmp.eq.s32.totalorder %v378_v41, %v392_v36 }
  0xa7   : > { %v360_v17 = vpop.xlane.xlu0 %359 }
  0xa8   : > { %687 = vrcp.f32 %v360_v17  ;;  %v372_v21 = vand.u32 2147483648, %v360_v17  ;;  %v370_v23 = vand.u32 2147483647, %v360_v17  ;;  %vm366_vm6 = vweird.f32 %v360_v17 }
  0xaa   : > { %v373_v25 = vor.u32 1.1754944e-38, %v372_v21  ;;  %vm371_vm8 = vcmp.eq.f32.partialorder %v370_v23, 8.507059e+37 }
  0xae   : > { %v688_v18 = vpop.eup %687 }
  0xaf   : > { %v362_v19 = vmul.f32 %v688_v18, %v360_v17  ;;  %vm367_vm5 = vweird.f32 %v688_v18 }
  0xb0   : > { %vm368_vm7 = vmor %vm366_vm6, %vm367_vm5 }
  0xb1   : > { %v363_v20 = vsub.f32 1.0, %v362_v19 }
  0xb3   : > { %v364_v22 = vmul.f32 %v688_v18, %v363_v20 }
  0xb5   : > { %v365_v24 = vadd.f32 %v688_v18, %v364_v22 }
  0xb7   : > { %v369_v26 = vsel %vm368_vm7, %v688_v18, %v365_v24 }
  0xb8   : > { %v374_v27 = vsel %vm371_vm8, %v373_v25, %v369_v26 }
  0xb9   : > { %v375_v28 = vmul.f32 %v374_v27, %v355_v13 }
  0xba   : > { %v381_v39 = vpop.permute.xlu0 %380 }
  0xbb   : > { %395 = vperm.xlu2 %681, %v375_v28   ;;  %385 = vperm.xlu1 %680, %v375_v28   ;;  %vm382_vm10 = vcmp.eq.s32.totalorder %v378_v41, %v381_v39 }
  0xc3   : > { %683 = vset.pattern.permute.xlu1 %v787_v16  ;;  %682 = vset.pattern.permute.xlu2 %v787_v16 }
  0xc4   : > { %405 = vperm.xlu1 %683, %v375_v28   ;;  %401 = vperm.xlu2 %682, %v376_v2  }
 0x115   : > { %v396_v37 = vpop.permute.xlu2 %395 }
 0x116   : > { %v398_v44 = vsel %vm393_vm11, %v396_v37, 0.0 }
 0x11e   : > { %v402_v42 = vpop.permute.xlu2 %401 }
 0x11f   : > { %vm403_vm12 = vcmp.eq.s32.totalorder %v378_v41, %v402_v42 }
 0x12d   : > { %v386_v40 = vpop.permute.xlu1 %385 }
 0x12e   : > { %v388_v43 = vsel %vm382_vm10, %v386_v40, 0.0 }
 0x12f   : > { %v399_v45 = vadd.f32 %v398_v44, %v388_v43 }
 0x136   : > { %v406_v46 = vpop.permute.xlu1 %405 }
 0x137   : > { %v408_v47 = vsel %vm403_vm12, %v406_v46, 0.0 }
 0x138   : > { %v409_v48 = vadd.f32 %v408_v47, %v399_v45 }
 0x13a   : > { %598 = vmatmul.msk.f32.vlgmr.msra.gmra.mxu0 %vm410_vm13, %v409_v48 }
 0x1b7   : > { %v435_v55 = vpop.f32.mrf.mxu0 }
 0x1b8   : > { %v438_v56 = vadd.f32 %v435_v55, %v333_v54 }
 0x1ba   : > { %439 = vst [vmem:[%s298_s0] sm:$0xff] %v438_v56 }
 0x1bb   : > { %716 = shalt.err (!%p713_p7)
}
 0x1bc   : > { %604 = dma.vmem_to_hbm [thread:$0]  (%p869_p3), %s456_s1, 128, %s458_s12, %s441_s22  }
 0x1bd PF: > { %p610_p9 = scmp.ge.s32.totalorder %s783_s25, 2  ;;  %s469_s0 = sand.u32 1, %s755_s18  }
 0x1be   : > { %s470_s9 = scalar_lea.sflag [#allocation3], %s469_s0 }
 0x1bf   : > { %p607_p10 = pnand %p610_p9, %p878_p8 }
 0x1c1   : > { %p608_p11 = pneg %p607_p10 }
 0x1c3   : > { %750 = dma.done.wait (%p608_p11), %s470_s9, 128  }
 0x1c4   : > { %752 = vsyncadd (%p608_p11), %s470_s9, 4294967168  ;;  %s18_s25 = sadd.s32 1, %s783_s25   ;;  %s973_s18 = smov %s759_s19 }
 0x1c5   : > { %p15_p12 = scmp.ge.s32.totalorder %s18_s25, 6   ;;  %s974_s19 = smov %s763_s20 }
 0x1c6   : > { %s975_s20 = smov %s887_s11  ;;  %s976_s21 = smov %s775_s23 }
 0x1c7   : > { %s977_s22 = smov %s779_s24  ;;  %s978_s23 = smov %s981_s28 }
 0x1c8   : > { %s979_s24 = smov %s985_s29  ;;  %17 = sbr.rel (!%p15_p12) target bundleno = 8 (0x8), region = 84 }
 0x1cd   :  { %476 = vsyncpa [#allocation3], 1 }
 0x1ce   :  { %478 = vsyncpa [#allocation3 + $0x1], 1 }

</bundles_post_ra>
